<compile_context>
chip_gen: v6e
topology: v6e:2x2x1
jax: 0.10.0
libtpu: 0.0.40
codegen_flags: <defaults>
</compile_context>

<pallas_src>
import jax
import jax.numpy as jnp
from jax.experimental import pallas as pl
from jax.experimental.pallas import tpu as pltpu

# ---------------- sizes (small, consistent with the module) ----------------
B = 2            # batch (t.shape[0])
N = 8            # number of graph nodes (x.shape[1])
INPUT_SHAPE = 16 # input feature dim (nn.Linear(input_shape, time_dim))
TIME_DIM = 32    # time embedding dim == conv1 input_dim
HIDDEN_DIM = 32  # conv1 output / conv2 input
OUTPUT_DIM = 16  # conv2 output

# packed-lane layout constants
WB = B * TIME_DIM            # 64: lane width of every packed block (= B*HIDDEN_DIM)
N_WBLOCKS = 9                # wh | wk1 wq1 wv1 ws1 | wk2 wq2 wv2 ws2
BIAS_ROW0 = N_WBLOCKS * WB   # 576: first bias row in the weight slab
N_BIAS_ROWS = 8
WSLAB_ROWS = BIAS_ROW0 + N_BIAS_ROWS   # 584
ACT_ROWS = 2 * N             # rows 0:N = node features, row N = (bias + time emb), rest 0


# ---------------- positional encoding (tiny; plain-JAX glue, inside jit) ----------------
def pos_encoding(t, emb_dim, n=10000.0):
    # t: [B, 1] float32  ->  [B, emb_dim]   (assumes even emb_dim, as in the module)
    inv_freq = 1.0 / (n ** (jnp.arange(0, emb_dim, 2, dtype=jnp.float32) / emb_dim))
    ang = t * inv_freq                      # [B, emb_dim // 2]
    pe = jnp.zeros((t.shape[0], emb_dim), jnp.float32)
    pe = pe.at[:, 0::2].set(jnp.sin(ang))
    pe = pe.at[:, 1::2].set(jnp.cos(ang))
    return pe


# ---------------- fused kernel: hidden+time, conv1+ReLU, conv2 (grid-less) ----------------
def _gcn_fused_kernel(w_ref, acts_ref, adjT_ref, o_ref):
    # w_ref    : (584, 64)  weight slab: nine (64,64) block-diagonal matrices + 8 bias rows
    # acts_ref : (16, 64)   rows 0:N node features (batch packed into lanes), row N = tb
    # adjT_ref : (N, N)     adjT[j, i] = #edges j -> i  (same graph for every batch)
    # o_ref    : (N, 64)    packed output (cols 0:16 batch0, 16:32 batch1, 32:64 zero)

    # Hoist the adjacency broadcast once; reused by both convs (JAX does not CSE it).
    adjT3 = adjT_ref[...][:, :, None]                       # (N, N, 1)

    x = acts_ref[0:N, :]                                    # (N, WB)
    tb = acts_ref[N:N + 1, :]                               # (1, WB)  hidden bias + time emb

    def wblk(i):                                            # i-th (WB, WB) weight block
        return w_ref[i * WB:(i + 1) * WB, :]

    def brow(i):                                            # i-th (1, WB) bias row
        return w_ref[BIAS_ROW0 + i:BIAS_ROW0 + i + 1, :]

    # 1) hidden Linear + (bias + time embedding); batch lives in the lane axis
    h = jnp.dot(x, wblk(0), preferred_element_type=jnp.float32) + tb    # (N, WB)

    def conv(h, i0, j0):
        k = jnp.dot(h, wblk(i0 + 0), preferred_element_type=jnp.float32) + brow(j0 + 0)
        q = jnp.dot(h, wblk(i0 + 1), preferred_element_type=jnp.float32) + brow(j0 + 1)
        v = jnp.dot(h, wblk(i0 + 2), preferred_element_type=jnp.float32) + brow(j0 + 2)
        s = jnp.dot(h, wblk(i0 + 3), preferred_element_type=jnp.float32) + brow(j0 + 3)
        # gate[j, i, f] = sigmoid(q[j, f] + k[i, f]): the reduction axis j is the leading
        # (untiled) axis -> plain VPU vreg adds, no cross-sublane XLU reduce; the batch is
        # packed into the lane axis f, so both batches are processed in one pass.
        gate = jax.nn.sigmoid(q[:, None, :] + k[None, :, :])            # (N, N, WB)
        msg = jnp.sum(adjT3 * gate * v[:, None, :], axis=0)             # (N, WB)
        return msg + s                                                   # + skip (+root bias)

    h = jnp.maximum(conv(h, 1, 0), 0.0)        # conv1 + fused ReLU
    o_ref[...] = conv(h, 5, 4)                 # conv2


def _gcn_fused(w_slab, acts, adjT):
    vmem = lambda: pl.BlockSpec(memory_space=pltpu.MemorySpace.VMEM)
    return pl.pallas_call(
        _gcn_fused_kernel,
        out_shape=jax.ShapeDtypeStruct((N, WB), jnp.float32),
        in_specs=[vmem(), vmem(), vmem()],
        out_specs=vmem(),
    )(w_slab, acts, adjT)


# ---------------- init-time parameter packing (runs once, outside the hot path) ----------------
def _bdiag(w, rows, cols):
    # place w on the per-batch block diagonal of a (rows, cols) zero matrix
    fin, fout = w.shape
    m = jnp.zeros((rows, cols), jnp.float32)
    for b in range(B):
        m = m.at[b * fin:(b + 1) * fin, b * fout:(b + 1) * fout].set(w)
    return m


def _brow(bvec, cols):
    # tile a per-feature bias across the per-batch lane blocks (zero padding beyond)
    fout = bvec.shape[0]
    r = jnp.zeros((cols,), jnp.float32)
    for b in range(B):
        r = r.at[b * fout:(b + 1) * fout].set(bvec)
    return r[None, :]


def pack_params(params, adj):
    """Build the lane-dense weight slab, packed hidden bias and transposed adjacency."""
    c1, c2 = params["conv1"], params["conv2"]
    blocks = [
        _bdiag(params["w_hidden"], WB, WB),                                  # hidden Linear
        _bdiag(c1["wk"], WB, WB), _bdiag(c1["wq"], WB, WB),                  # conv1
        _bdiag(c1["wv"], WB, WB), _bdiag(c1["ws"], WB, WB),
        _bdiag(c2["wk"], WB, WB), _bdiag(c2["wq"], WB, WB),                  # conv2
        _bdiag(c2["wv"], WB, WB), _bdiag(c2["ws"], WB, WB),
    ]
    bias_rows = [
        _brow(c1["bk"], WB), _brow(c1["bq"], WB), _brow(c1["bv"], WB), _brow(c1["bias"], WB),
        _brow(c2["bk"], WB), _brow(c2["bq"], WB), _brow(c2["bv"], WB), _brow(c2["bias"], WB),
    ]
    w_slab = jnp.concatenate(blocks + bias_rows, axis=0)    # (584, 64)
    assert w_slab.shape == (WSLAB_ROWS, WB)
    bh_packed = _brow(params["b_hidden"], WB)               # (1, 64)
    adjT = adj.T.astype(jnp.float32)                        # adjT[j, i] = #edges j -> i
    return {"w_slab": w_slab, "bh": bh_packed, "adjT": adjT}


# ---------------- jitted forward: pos-encoding + slab assembly + one kernel launch ----------------
@jax.jit
def gcn_forward(packed, x, t):
    Bb, Nn, Fin = x.shape
    t = t.reshape(-1, 1).astype(jnp.float32)                  # t.unsqueeze(-1).float()
    t_pe = pos_encoding(t, TIME_DIM)                          # [B, time_dim]
    # fold hidden bias + per-batch time embedding into one packed (1, WB) row
    tb = packed["bh"] + t_pe.reshape(1, Bb * TIME_DIM)        # [1, B*time_dim]
    # activation slab: rows 0:N = per-node features with batch packed into lanes,
    # row N = bias+time row, remaining rows zero.
    x_packed = jnp.transpose(x, (1, 0, 2)).reshape(Nn, Bb * Fin)   # (N, B*Fin)
    acts = jnp.zeros((ACT_ROWS, WB), jnp.float32)
    acts = acts.at[0:Nn, 0:Bb * Fin].set(x_packed)
    acts = acts.at[Nn:Nn + 1, :].set(tb)

    out = _gcn_fused(packed["w_slab"], acts, packed["adjT"])   # (N, WB) packed
    out = out[:, :Bb * OUTPUT_DIM].reshape(Nn, Bb, OUTPUT_DIM)
    return jnp.transpose(out, (1, 0, 2))                       # (B, N, OUTPUT_DIM)


# ---------------- pure-JAX reference (edge-list based, for verification) ----------------
def _conv_ref(x, edge_index, p):
    src, dst = edge_index[0], edge_index[1]
    k = x @ p["wk"] + p["bk"]
    q = x @ p["wq"] + p["bq"]
    v = x @ p["wv"] + p["bv"]
    gate = jax.nn.sigmoid(k[:, dst, :] + q[:, src, :])        # (B, E, Fout)
    msg = gate * v[:, src, :]
    out = jnp.zeros((x.shape[0], x.shape[1], p["wk"].shape[1]), jnp.float32)
    out = out.at[:, dst, :].add(msg)
    return out + x @ p["ws"] + p["bias"]


def gcn_forward_ref(params, x, edge_index, t):
    t = t.reshape(-1, 1).astype(jnp.float32)
    t_pe = pos_encoding(t, TIME_DIM)
    h = x @ params["w_hidden"] + params["b_hidden"] + t_pe[:, None, :]
    h = jax.nn.relu(_conv_ref(h, edge_index, params["conv1"]))
    return _conv_ref(h, edge_index, params["conv2"])


# ---------------- deterministic parameter init ----------------
def init_params(key):
    def lin(key, fin, fout, scale=0.1):
        return scale * jax.random.normal(key, (fin, fout), jnp.float32)

    ks = jax.random.split(key, 12)

    def conv_params(kset, fin, fout):
        return {
            "wk": lin(kset[0], fin, fout), "bk": 0.05 * jax.random.normal(kset[1], (fout,)),
            "wq": lin(kset[2], fin, fout), "bq": 0.05 * jax.random.normal(kset[3], (fout,)),
            "wv": lin(kset[4], fin, fout), "bv": 0.05 * jax.random.normal(kset[5], (fout,)),
            "ws": lin(kset[6], fin, fout),                       # lin_skip (no bias)
            "bias": 0.05 * jax.random.normal(kset[7], (fout,)),  # conv root bias
        }

    return {
        "w_hidden": lin(ks[0], INPUT_SHAPE, TIME_DIM),
        "b_hidden": 0.05 * jax.random.normal(ks[1], (TIME_DIM,)),
        "conv1": conv_params(jax.random.split(ks[2], 8), TIME_DIM, HIDDEN_DIM),
        "conv2": conv_params(jax.random.split(ks[3], 8), HIDDEN_DIM, OUTPUT_DIM),
    }


if __name__ == "__main__":
    key = jax.random.PRNGKey(0)
    k_par, k_x, k_t = jax.random.split(key, 3)

    params = init_params(k_par)

    # data: [B, N, input_shape]; t: [B] (timestep per graph in the batch)
    x = jax.random.normal(k_x, (B, N, INPUT_SHAPE), jnp.float32)
    t = jax.random.randint(k_t, (B,), 0, 50).astype(jnp.float32)

    # edge_index: bidirectional ring over N nodes, shape [2, E]
    src = jnp.concatenate([jnp.arange(N), (jnp.arange(N) + 1) % N]).astype(jnp.int32)
    dst = jnp.concatenate([(jnp.arange(N) + 1) % N, jnp.arange(N)]).astype(jnp.int32)
    edge_index = jnp.stack([src, dst])                          # [2, 2N]

    # dense adjacency A[i, j] = #edges j -> i (glue for the kernel formulation)
    adj = jnp.zeros((N, N), jnp.float32).at[dst, src].add(1.0)

    # init-time packing (runs once; not on the per-call path)
    packed = pack_params(params, adj)

    out = gcn_forward(packed, x, t)
    out = jax.block_until_ready(out)

    ref = gcn_forward_ref(params, x, edge_index, t)
    assert out.shape == (B, N, OUTPUT_DIM)
    assert jnp.allclose(out, ref, atol=1e-4, rtol=1e-4), "Pallas output mismatch vs reference"

    print("KERNEL_OK")
</pallas_src>

<mosaic_0001>
module attributes {stable_mosaic.version = 11 : i64} {
  func.func @_gcn_fused_kernel(%arg0: memref<584x64xf32, #tpu.memory_space<vmem>>, %arg1: memref<16x64xf32, #tpu.memory_space<vmem>>, %arg2: memref<8x8xf32, #tpu.memory_space<vmem>>, %arg3: memref<8x64xf32, #tpu.memory_space<vmem>>) attributes {dimension_semantics = [], scalar_prefetch = 0 : i64, scratch_operands = 0 : i64, tpu.core_type = #tpu.core_type<tc>} {
    %c0 = arith.constant 0 : index
    %c0_0 = arith.constant 0 : index
    %0 = vector.load %arg2[%c0, %c0_0] : memref<8x8xf32, #tpu.memory_space<vmem>>, vector<8x8xf32>
    %1 = vector.shape_cast %0 : vector<8x8xf32> to vector<8x8x1xf32>
    %c0_1 = arith.constant 0 : index
    %c0_2 = arith.constant 0 : index
    %2 = vector.load %arg1[%c0_1, %c0_2] : memref<16x64xf32, #tpu.memory_space<vmem>>, vector<8x64xf32>
    %c8 = arith.constant 8 : index
    %c0_3 = arith.constant 0 : index
    %3 = vector.load %arg1[%c8, %c0_3] : memref<16x64xf32, #tpu.memory_space<vmem>>, vector<1x64xf32>
    %c0_4 = arith.constant 0 : index
    %c0_5 = arith.constant 0 : index
    %4 = vector.load %arg0[%c0_4, %c0_5] : memref<584x64xf32, #tpu.memory_space<vmem>>, vector<64x64xf32>
    %cst = arith.constant dense<0.000000e+00> : vector<8x64xf32>
    %5 = tpu.matmul %2, %4, %cst {dimension_numbers = #tpu.dot_dimension_numbers<[1], [0], [0], [1], [0, 0, 1, 1], [], []>} : vector<8x64xf32>, vector<64x64xf32>, vector<8x64xf32> -> vector<8x64xf32>
    %6 = vector.broadcast %3 : vector<1x64xf32> to vector<8x64xf32>
    %7 = arith.addf %5, %6 : vector<8x64xf32>
    %c64 = arith.constant 64 : index
    %c0_6 = arith.constant 0 : index
    %8 = vector.load %arg0[%c64, %c0_6] : memref<584x64xf32, #tpu.memory_space<vmem>>, vector<64x64xf32>
    %cst_7 = arith.constant dense<0.000000e+00> : vector<8x64xf32>
    %9 = tpu.matmul %7, %8, %cst_7 {dimension_numbers = #tpu.dot_dimension_numbers<[1], [0], [0], [1], [0, 0, 1, 1], [], []>} : vector<8x64xf32>, vector<64x64xf32>, vector<8x64xf32> -> vector<8x64xf32>
    %c576 = arith.constant 576 : index
    %c0_8 = arith.constant 0 : index
    %10 = vector.load %arg0[%c576, %c0_8] : memref<584x64xf32, #tpu.memory_space<vmem>>, vector<1x64xf32>
    %11 = vector.broadcast %10 : vector<1x64xf32> to vector<8x64xf32>
    %12 = arith.addf %9, %11 : vector<8x64xf32>
    %c128 = arith.constant 128 : index
    %c0_9 = arith.constant 0 : index
    %13 = vector.load %arg0[%c128, %c0_9] : memref<584x64xf32, #tpu.memory_space<vmem>>, vector<64x64xf32>
    %cst_10 = arith.constant dense<0.000000e+00> : vector<8x64xf32>
    %14 = tpu.matmul %7, %13, %cst_10 {dimension_numbers = #tpu.dot_dimension_numbers<[1], [0], [0], [1], [0, 0, 1, 1], [], []>} : vector<8x64xf32>, vector<64x64xf32>, vector<8x64xf32> -> vector<8x64xf32>
    %c577 = arith.constant 577 : index
    %c0_11 = arith.constant 0 : index
    %15 = vector.load %arg0[%c577, %c0_11] : memref<584x64xf32, #tpu.memory_space<vmem>>, vector<1x64xf32>
    %16 = vector.broadcast %15 : vector<1x64xf32> to vector<8x64xf32>
    %17 = arith.addf %14, %16 : vector<8x64xf32>
    %c192 = arith.constant 192 : index
    %c0_12 = arith.constant 0 : index
    %18 = vector.load %arg0[%c192, %c0_12] : memref<584x64xf32, #tpu.memory_space<vmem>>, vector<64x64xf32>
    %cst_13 = arith.constant dense<0.000000e+00> : vector<8x64xf32>
    %19 = tpu.matmul %7, %18, %cst_13 {dimension_numbers = #tpu.dot_dimension_numbers<[1], [0], [0], [1], [0, 0, 1, 1], [], []>} : vector<8x64xf32>, vector<64x64xf32>, vector<8x64xf32> -> vector<8x64xf32>
    %c578 = arith.constant 578 : index
    %c0_14 = arith.constant 0 : index
    %20 = vector.load %arg0[%c578, %c0_14] : memref<584x64xf32, #tpu.memory_space<vmem>>, vector<1x64xf32>
    %21 = vector.broadcast %20 : vector<1x64xf32> to vector<8x64xf32>
    %22 = arith.addf %19, %21 : vector<8x64xf32>
    %c256 = arith.constant 256 : index
    %c0_15 = arith.constant 0 : index
    %23 = vector.load %arg0[%c256, %c0_15] : memref<584x64xf32, #tpu.memory_space<vmem>>, vector<64x64xf32>
    %cst_16 = arith.constant dense<0.000000e+00> : vector<8x64xf32>
    %24 = tpu.matmul %7, %23, %cst_16 {dimension_numbers = #tpu.dot_dimension_numbers<[1], [0], [0], [1], [0, 0, 1, 1], [], []>} : vector<8x64xf32>, vector<64x64xf32>, vector<8x64xf32> -> vector<8x64xf32>
    %c579 = arith.constant 579 : index
    %c0_17 = arith.constant 0 : index
    %25 = vector.load %arg0[%c579, %c0_17] : memref<584x64xf32, #tpu.memory_space<vmem>>, vector<1x64xf32>
    %26 = vector.broadcast %25 : vector<1x64xf32> to vector<8x64xf32>
    %27 = arith.addf %24, %26 : vector<8x64xf32>
    %28 = vector.shape_cast %17 : vector<8x64xf32> to vector<8x1x64xf32>
    %29 = vector.shape_cast %12 : vector<8x64xf32> to vector<1x8x64xf32>
    %30 = vector.broadcast %28 : vector<8x1x64xf32> to vector<8x8x64xf32>
    %31 = vector.broadcast %29 : vector<1x8x64xf32> to vector<8x8x64xf32>
    %32 = arith.addf %30, %31 : vector<8x8x64xf32>
    %33 = arith.negf %32 : vector<8x8x64xf32>
    %34 = math.exp %33 : vector<8x8x64xf32>
    %cst_18 = arith.constant 1.000000e+00 : f32
    %35 = vector.broadcast %cst_18 : f32 to vector<8x8x64xf32>
    %36 = arith.addf %35, %34 : vector<8x8x64xf32>
    %37 = arith.divf %35, %36 : vector<8x8x64xf32>
    %38 = vector.broadcast %1 : vector<8x8x1xf32> to vector<8x8x64xf32>
    %39 = arith.mulf %38, %37 : vector<8x8x64xf32>
    %40 = vector.shape_cast %22 : vector<8x64xf32> to vector<8x1x64xf32>
    %41 = vector.broadcast %40 : vector<8x1x64xf32> to vector<8x8x64xf32>
    %42 = arith.mulf %39, %41 : vector<8x8x64xf32>
    %cst_19 = arith.constant dense<0.000000e+00> : vector<8x64xf32>
    %43 = vector.multi_reduction <add>, %42, %cst_19 [0] : vector<8x8x64xf32> to vector<8x64xf32>
    %44 = arith.addf %43, %27 : vector<8x64xf32>
    %cst_20 = arith.constant 0.000000e+00 : f32
    %45 = vector.broadcast %cst_20 : f32 to vector<8x64xf32>
    %46 = arith.maximumf %44, %45 : vector<8x64xf32>
    %c320 = arith.constant 320 : index
    %c0_21 = arith.constant 0 : index
    %47 = vector.load %arg0[%c320, %c0_21] : memref<584x64xf32, #tpu.memory_space<vmem>>, vector<64x64xf32>
    %cst_22 = arith.constant dense<0.000000e+00> : vector<8x64xf32>
    %48 = tpu.matmul %46, %47, %cst_22 {dimension_numbers = #tpu.dot_dimension_numbers<[1], [0], [0], [1], [0, 0, 1, 1], [], []>} : vector<8x64xf32>, vector<64x64xf32>, vector<8x64xf32> -> vector<8x64xf32>
    %c580 = arith.constant 580 : index
    %c0_23 = arith.constant 0 : index
    %49 = vector.load %arg0[%c580, %c0_23] : memref<584x64xf32, #tpu.memory_space<vmem>>, vector<1x64xf32>
    %50 = vector.broadcast %49 : vector<1x64xf32> to vector<8x64xf32>
    %51 = arith.addf %48, %50 : vector<8x64xf32>
    %c384 = arith.constant 384 : index
    %c0_24 = arith.constant 0 : index
    %52 = vector.load %arg0[%c384, %c0_24] : memref<584x64xf32, #tpu.memory_space<vmem>>, vector<64x64xf32>
    %cst_25 = arith.constant dense<0.000000e+00> : vector<8x64xf32>
    %53 = tpu.matmul %46, %52, %cst_25 {dimension_numbers = #tpu.dot_dimension_numbers<[1], [0], [0], [1], [0, 0, 1, 1], [], []>} : vector<8x64xf32>, vector<64x64xf32>, vector<8x64xf32> -> vector<8x64xf32>
    %c581 = arith.constant 581 : index
    %c0_26 = arith.constant 0 : index
    %54 = vector.load %arg0[%c581, %c0_26] : memref<584x64xf32, #tpu.memory_space<vmem>>, vector<1x64xf32>
    %55 = vector.broadcast %54 : vector<1x64xf32> to vector<8x64xf32>
    %56 = arith.addf %53, %55 : vector<8x64xf32>
    %c448 = arith.constant 448 : index
    %c0_27 = arith.constant 0 : index
    %57 = vector.load %arg0[%c448, %c0_27] : memref<584x64xf32, #tpu.memory_space<vmem>>, vector<64x64xf32>
    %cst_28 = arith.constant dense<0.000000e+00> : vector<8x64xf32>
    %58 = tpu.matmul %46, %57, %cst_28 {dimension_numbers = #tpu.dot_dimension_numbers<[1], [0], [0], [1], [0, 0, 1, 1], [], []>} : vector<8x64xf32>, vector<64x64xf32>, vector<8x64xf32> -> vector<8x64xf32>
    %c582 = arith.constant 582 : index
    %c0_29 = arith.constant 0 : index
    %59 = vector.load %arg0[%c582, %c0_29] : memref<584x64xf32, #tpu.memory_space<vmem>>, vector<1x64xf32>
    %60 = vector.broadcast %59 : vector<1x64xf32> to vector<8x64xf32>
    %61 = arith.addf %58, %60 : vector<8x64xf32>
    %c512 = arith.constant 512 : index
    %c0_30 = arith.constant 0 : index
    %62 = vector.load %arg0[%c512, %c0_30] : memref<584x64xf32, #tpu.memory_space<vmem>>, vector<64x64xf32>
    %cst_31 = arith.constant dense<0.000000e+00> : vector<8x64xf32>
    %63 = tpu.matmul %46, %62, %cst_31 {dimension_numbers = #tpu.dot_dimension_numbers<[1], [0], [0], [1], [0, 0, 1, 1], [], []>} : vector<8x64xf32>, vector<64x64xf32>, vector<8x64xf32> -> vector<8x64xf32>
    %c583 = arith.constant 583 : index
    %c0_32 = arith.constant 0 : index
    %64 = vector.load %arg0[%c583, %c0_32] : memref<584x64xf32, #tpu.memory_space<vmem>>, vector<1x64xf32>
    %65 = vector.broadcast %64 : vector<1x64xf32> to vector<8x64xf32>
    %66 = arith.addf %63, %65 : vector<8x64xf32>
    %67 = vector.shape_cast %56 : vector<8x64xf32> to vector<8x1x64xf32>
    %68 = vector.shape_cast %51 : vector<8x64xf32> to vector<1x8x64xf32>
    %69 = vector.broadcast %67 : vector<8x1x64xf32> to vector<8x8x64xf32>
    %70 = vector.broadcast %68 : vector<1x8x64xf32> to vector<8x8x64xf32>
    %71 = arith.addf %69, %70 : vector<8x8x64xf32>
    %72 = arith.negf %71 : vector<8x8x64xf32>
    %73 = math.exp %72 : vector<8x8x64xf32>
    %cst_33 = arith.constant 1.000000e+00 : f32
    %74 = vector.broadcast %cst_33 : f32 to vector<8x8x64xf32>
    %75 = arith.addf %74, %73 : vector<8x8x64xf32>
    %76 = arith.divf %74, %75 : vector<8x8x64xf32>
    %77 = vector.broadcast %1 : vector<8x8x1xf32> to vector<8x8x64xf32>
    %78 = arith.mulf %77, %76 : vector<8x8x64xf32>
    %79 = vector.shape_cast %61 : vector<8x64xf32> to vector<8x1x64xf32>
    %80 = vector.broadcast %79 : vector<8x1x64xf32> to vector<8x8x64xf32>
    %81 = arith.mulf %78, %80 : vector<8x8x64xf32>
    %cst_34 = arith.constant dense<0.000000e+00> : vector<8x64xf32>
    %82 = vector.multi_reduction <add>, %81, %cst_34 [0] : vector<8x8x64xf32> to vector<8x64xf32>
    %83 = arith.addf %82, %66 : vector<8x64xf32>
    %c0_35 = arith.constant 0 : index
    %c0_36 = arith.constant 0 : index
    %84 = vector.load %arg3[%c0_35, %c0_36] : memref<8x64xf32, #tpu.memory_space<vmem>>, vector<8x64xf32>
    tpu.vector_store %arg3[%c0_35, %c0_36], %83 {strides = array<i32>} : memref<8x64xf32, #tpu.memory_space<vmem>>, vector<8x64xf32>,
    return
  }
}

</mosaic_0001>

<bundles_post_ra>
// kernel: gcn_forward.1
= control target key start
LH: loop header
LB: loop body
LE: loop exit
PB: predicated region body
PF: predicated region fallthrough
CT: control target
= control target key end

     0   :  { %v1724_v0 = vmov 0.0   ;;  %vm1725_vm0 = vmmov 0   ;;  %vm85_vm1 = vcmask 523264   ;;  %v15_v26 = vlaneseq  ;;  %s2225_s0 = inlined_call_operand.vmem [shape: f32[584,64], index: 0, kind: input, shape index: {}]   ;;  %s2226_s1 = inlined_call_operand.vmem [shape: f32[16,64], index: 1, kind: input, shape index: {}]   ;;  %s2227_s2 = inlined_call_operand.vmem [shape: f32[8,8], index: 2, kind: input, shape index: {}]   ;;  %s2228_s3 = inlined_call_operand.vmem [shape: f32[8,64], index: 3, kind: output, shape index: {}]  }
   0x1   :  { %1486 = vmatprep.subr.mxu0 %v1724_v0  ;;  %v80_v1 = vld [vmem:[%s2225_s0 + $0x38] sm:$0xff]  ;;  %v79_v2 = vld [vmem:[%s2225_s0 + $0x30] sm:$0xff]  ;;  %1502 = vmatprep.mubr.msk.f32.mxu0 %vm1725_vm0, %v1724_v0  ;;  %v78_v3 = vld [vmem:[%s2225_s0 + $0x28] sm:$0xff] }
   0x2   :  { %1487 = vmatpush3.msra.mxu0 %v80_v1  ;;  %1505 = vmatprep.subr.mxu1 %v1724_v0  ;;  %v166_v4 = vld [vmem:[%s2225_s0 + $0x78] sm:$0xff]  ;;  %v165_v5 = vld [vmem:[%s2225_s0 + $0x70] sm:$0xff]  ;;  %v77_v6 = vld [vmem:[%s2225_s0 + $0x20] sm:$0xff]  ;;  %v1855_v27 = vshrl.u32 %v15_v26, 7 }
   0x3   :  { %1488 = vmatprep.subr.mxu0 %v1724_v0  ;;  %1521 = vmatprep.mubr.msk.f32.mxu1 %vm1725_vm0, %v1724_v0  ;;  %v164_v7 = vld [vmem:[%s2225_s0 + $0x68] sm:$0xff]  ;;  %v76_v8 = vld [vmem:[%s2225_s0 + $0x18] sm:$0xff]  ;;  %v163_v9 = vld [vmem:[%s2225_s0 + $0x60] sm:$0xff] }
   0x4   :  { %1489 = vmatpush3.msra.mxu0 %v79_v2  ;;  %1506 = vmatpush3.msra.mxu1 %v166_v4  ;;  %v75_v10 = vld [vmem:[%s2225_s0 + $0x10] sm:$0xff]  ;;  %v162_v11 = vld [vmem:[%s2225_s0 + $0x58] sm:$0xff]  ;;  %v74_v12 = vld [vmem:[%s2225_s0 + $0x8] sm:$0xff]  ;;  %v1861_v29 = vsub.s32 0, %v1855_v27  ;;  %v31_v30 = vsub.s32 2, %v1855_v27  ;;  %v24_v31 = vsub.s32 1, %v1855_v27 }
   0x5   :  { %1490 = vmatprep.subr.mxu0 %v1724_v0  ;;  %1507 = vmatprep.subr.mxu1 %v1724_v0  ;;  %v161_v13 = vld [vmem:[%s2225_s0 + $0x50] sm:$0xff]  ;;  %v73_v14 = vld [vmem:[%s2225_s0] sm:$0xff]  ;;  %v252_v16 = vld [vmem:[%s2225_s0 + $0xb8] sm:$0xff]  ;;  %v38_v32 = vsub.s32 3, %v1855_v27  ;;  %v45_v37 = vsub.s32 4, %v1855_v27  ;;  %v52_v38 = vsub.s32 5, %v1855_v27 }
   0x6   :  { %1491 = vmatpush3.msra.mxu0 %v78_v3  ;;  %1508 = vmatpush3.msra.mxu1 %v165_v5  ;;  %v71_v15 = vld [vmem:[%s2226_s1] sm:$0xff]  ;;  %v160_v17 = vld [vmem:[%s2225_s0 + $0x48] sm:$0xff]  ;;  %v251_v18 = vld [vmem:[%s2225_s0 + $0xb0] sm:$0xff]  ;;  %v59_v41 = vsub.s32 6, %v1855_v27  ;;  %v66_v42 = vsub.s32 7, %v1855_v27 }
   0x7   :  { %1492 = vmatprep.subr.mxu0 %v1724_v0  ;;  %1509 = vmatprep.subr.mxu1 %v1724_v0  ;;  %v250_v19 = vld [vmem:[%s2225_s0 + $0xa8] sm:$0xff]  ;;  %v249_v20 = vld [vmem:[%s2225_s0 + $0xa0] sm:$0xff]  ;;  %v248_v21 = vld [vmem:[%s2225_s0 + $0x98] sm:$0xff] }
   0x8   :  { %1493 = vmatpush3.msra.mxu0 %v77_v6  ;;  %1510 = vmatpush3.msra.mxu1 %v164_v7  ;;  %v247_v22 = vld [vmem:[%s2225_s0 + $0x90] sm:$0xff]  ;;  %v246_v23 = vld [vmem:[%s2225_s0 + $0x88] sm:$0xff]  ;;  %v159_v24 = vld [vmem:[%s2225_s0 + $0x40] sm:$0xff] }
   0x9   :  { %1494 = vmatprep.subr.mxu0 %v1724_v0  ;;  %1511 = vmatprep.subr.mxu1 %v1724_v0  ;;  %v245_v25 = vld [vmem:[%s2225_s0 + $0x80] sm:$0xff]  ;;  %v1371_v45 = vld [vmem:[%s2226_s1 + $0x8] ss:$0 sm:$0xff]  ;;  %v335_v48 = vld [vmem:[%s2225_s0 + $0xf8] sm:$0xff] }
   0xa   :  { %1495 = vmatpush3.msra.mxu0 %v76_v8  ;;  %1512 = vmatpush3.msra.mxu1 %v163_v9  ;;  %v14_v28 = vld [vmem:[%s2227_s2] sm:$0xff]  ;;  %v418_v49 = vld [vmem:[%s2225_s0 + $0x138] sm:$0xff]  ;;  %v334_v51 = vld [vmem:[%s2225_s0 + $0xf0] sm:$0xff] }
   0xb   :  { %1496 = vmatprep.subr.mxu0 %v1724_v0  ;;  %1513 = vmatprep.subr.mxu1 %v1724_v0  ;;  %v18_v33 = vrot.slane %v14_v28, %v1861_v29  ;;  %v32_v34 = vrot.slane %v14_v28, %v31_v30  ;;  %v25_v35 = vrot.slane %v14_v28, %v24_v31  ;;  %v417_v52 = vld [vmem:[%s2225_s0 + $0x130] sm:$0xff]  ;;  %v333_v53 = vld [vmem:[%s2225_s0 + $0xe8] sm:$0xff]  ;;  %v332_v55 = vld [vmem:[%s2225_s0 + $0xe0] sm:$0xff] }
   0xc   :  { %1497 = vmatpush3.msra.mxu0 %v75_v10  ;;  %1514 = vmatpush3.msra.mxu1 %v162_v11  ;;  %v39_v36 = vrot.slane %v14_v28, %v38_v32  ;;  %v46_v39 = vrot.slane %v14_v28, %v45_v37  ;;  %v53_v40 = vrot.slane %v14_v28, %v52_v38  ;;  %v416_v54 = vld [vmem:[%s2225_s0 + $0x128] sm:$0xff]  ;;  %v415_v56 = vld [vmem:[%s2225_s0 + $0x120] sm:$0xff]  ;;  %v331_v57 = vld [vmem:[%s2225_s0 + $0xd8] sm:$0xff] }
   0xd   :  { %1498 = vmatprep.subr.mxu0 %v1724_v0  ;;  %1515 = vmatprep.subr.mxu1 %v1724_v0  ;;  %v60_v43 = vrot.slane %v14_v28, %v59_v41  ;;  %v67_v44 = vrot.slane %v14_v28, %v66_v42  ;;  %v414_v58 = vld [vmem:[%s2225_s0 + $0x118] sm:$0xff]  ;;  %v330_v59 = vld [vmem:[%s2225_s0 + $0xd0] sm:$0xff]  ;;  %v329_v61 = vld [vmem:[%s2225_s0 + $0xc8] sm:$0xff] }
   0xe   :  { %1499 = vmatpush3.msra.mxu0 %v74_v12  ;;  %1516 = vmatpush3.msra.mxu1 %v161_v13  ;;  %v413_v60 = vld [vmem:[%s2225_s0 + $0x110] sm:$0xff]  ;;  %v412_v62 = vld [vmem:[%s2225_s0 + $0x108] sm:$0xff]  ;;  %v328_v63 = vld [vmem:[%s2225_s0 + $0xc0] sm:$0xff] }
   0xf   :  { %1500 = vmatprep.subr.mxu0 %v1724_v0  ;;  %1517 = vmatprep.subr.mxu1 %v1724_v0  ;;  %v411_v1 = vld [vmem:[%s2225_s0 + $0x100] sm:$0xff]  ;;  %v770_v2 = vld [vmem:[%s2225_s0 + $0x178] sm:$0xff]  ;;  %v769_v4 = vld [vmem:[%s2225_s0 + $0x170] sm:$0xff] }
  0x10   :  { %1501 = vmatpush3.msra.mxu0 %v73_v14  ;;  %1518 = vmatpush3.msra.mxu1 %v160_v17  ;;  %v856_v3 = vld [vmem:[%s2225_s0 + $0x1b8] sm:$0xff]  ;;  %v855_v5 = vld [vmem:[%s2225_s0 + $0x1b0] sm:$0xff]  ;;  %v768_v6 = vld [vmem:[%s2225_s0 + $0x168] sm:$0xff] }
  0x11   :  { %1503 = vmatmul.mubr.msk.f32.vlgmr.msra.gmra.mxu0 %vm85_vm1, %v71_v15  ;;  %1524 = vmatprep.subr.mxu0 %v1724_v0  ;;  %v854_v7 = vld [vmem:[%s2225_s0 + $0x1a8] sm:$0xff]  ;;  %v767_v8 = vld [vmem:[%s2225_s0 + $0x160] sm:$0xff]  ;;  %v766_v10 = vld [vmem:[%s2225_s0 + $0x158] sm:$0xff] }
  0x12   :  { %1525 = vmatpush3.msra.mxu0 %v252_v16  ;;  %1519 = vmatprep.subr.mxu1 %v1724_v0  ;;  %v853_v9 = vld [vmem:[%s2225_s0 + $0x1a0] sm:$0xff]  ;;  %v852_v11 = vld [vmem:[%s2225_s0 + $0x198] sm:$0xff]  ;;  %v765_v12 = vld [vmem:[%s2225_s0 + $0x150] sm:$0xff] }
  0x13   :  { %1526 = vmatprep.subr.mxu0 %v1724_v0  ;;  %1540 = vmatprep.mubr.msk.f32.mxu0 %vm1725_vm0, %v1724_v0  ;;  %v851_v13 = vld [vmem:[%s2225_s0 + $0x190] sm:$0xff]  ;;  %v764_v14 = vld [vmem:[%s2225_s0 + $0x148] sm:$0xff]  ;;  %v763_v16 = vld [vmem:[%s2225_s0 + $0x140] sm:$0xff] }
  0x14   :  { %1527 = vmatpush3.msra.mxu0 %v251_v18  ;;  %1520 = vmatpush3.msra.mxu1 %v159_v24  ;;  %v850_v15 = vld [vmem:[%s2225_s0 + $0x188] sm:$0xff]  ;;  %v849_v17 = vld [vmem:[%s2225_s0 + $0x180] sm:$0xff]  ;;  %v1726_v18 = vmov 1966171168  }
  0x15   :  { %1528 = vmatprep.subr.mxu0 %v1724_v0  ;;  %1543 = vmatprep.subr.mxu1 %v1724_v0  ;;  %v1373_v32 = vld [vmem:[%s2225_s0 + $0x240] ss:$0 sm:$0xff] }
  0x16   :  { %1529 = vmatpush3.msra.mxu0 %v250_v19  ;;  %20 = vbcast.lane.b32.xlu0 %v18_v33, 256  ;;  %v497_v19 = vunpack.c.l.s4 %v1726_v18 }
  0x17   :  { %1530 = vmatprep.subr.mxu0 %v1724_v0  ;;  %34 = vbcast.lane.b32.xlu1 %v32_v34, 256 }
  0x18   :  { %1531 = vmatpush3.msra.mxu0 %v249_v20  ;;  %v498_v20 = vunpack.c.0.s8 %v497_v19 }
  0x19   :  { %1532 = vmatprep.subr.mxu0 %v1724_v0 }
  0x1a   :  { %1533 = vmatpush3.msra.mxu0 %v248_v21  ;;  %27 = vbcast.lane.b32.xlu0 %v25_v35, 256  ;;  %v1375_v21 = vld [vmem:[%s2225_s0 + $0x241] ss:$0 sm:$0xff] }
  0x1b   :  { %1534 = vmatprep.subr.mxu0 %v1724_v0  ;;  %41 = vbcast.lane.b32.xlu1 %v39_v36, 256 }
  0x1c   :  { %1535 = vmatpush3.msra.mxu0 %v247_v22  ;;  %v2018_v22 = vsub.s32 %v498_v20, %v1855_v27 }
  0x1d   :  { %1536 = vmatprep.subr.mxu0 %v1724_v0 }
  0x1e   :  { %1537 = vmatpush3.msra.mxu0 %v246_v23  ;;  %48 = vbcast.lane.b32.xlu0 %v46_v39, 256 }
  0x1f   :  { %1538 = vmatprep.subr.mxu0 %v1724_v0  ;;  %55 = vbcast.lane.b32.xlu1 %v53_v40, 256 }
  0x20   :  { %1539 = vmatpush3.msra.mxu0 %v245_v25 }
  0x21   :  { %1562 = vmatprep.subr.mxu0 %v1724_v0 }
  0x22   :  { %62 = vbcast.lane.b32.xlu0 %v60_v43, 256 }
  0x23   :  { %69 = vbcast.lane.b32.xlu1 %v67_v44, 256 }
  0x88   :  { %v2042_v18 = vpop.permute.xlu0 %20 }
  0xd1   :  { %v155_v46 = vpop.f32.mrf.mxu0 }
  0xd2   :  { %v156_v47 = vadd.f32 %v1371_v45, %v155_v46 }
  0xd3   :  { %v1504_v50 = vpop.f32.mrf.mxu0 }
  0xd4   :  { %1522 = vmatmul.mubr.msk.f32.vlgmr.msra.gmra.mxu1 %vm85_vm1, %v156_v47  ;;  %1541 = vmatmul.mubr.msk.f32.vlgmr.msra.gmra.mxu0 %vm85_vm1, %v156_v47 }
  0xd5   :  { %1544 = vmatpush3.msra.mxu1 %v335_v48  ;;  %1563 = vmatpush3.msra.mxu0 %v418_v49 }
  0xd6   :  { %1545 = vmatprep.subr.mxu1 %v1724_v0  ;;  %1564 = vmatprep.subr.mxu0 %v1724_v0 }
  0xd7   :  { %1546 = vmatpush3.msra.mxu1 %v334_v51  ;;  %1565 = vmatpush3.msra.mxu0 %v417_v52 }
  0xd8   :  { %1547 = vmatprep.subr.mxu1 %v1724_v0  ;;  %1566 = vmatprep.subr.mxu0 %v1724_v0 }
  0xd9   :  { %1548 = vmatpush3.msra.mxu1 %v333_v53  ;;  %1567 = vmatpush3.msra.mxu0 %v416_v54 }
  0xda   :  { %1549 = vmatprep.subr.mxu1 %v1724_v0  ;;  %1568 = vmatprep.subr.mxu0 %v1724_v0 }
  0xdb   :  { %1550 = vmatpush3.msra.mxu1 %v332_v55  ;;  %1569 = vmatpush3.msra.mxu0 %v415_v56 }
  0xdc   :  { %1551 = vmatprep.subr.mxu1 %v1724_v0  ;;  %1570 = vmatprep.subr.mxu0 %v1724_v0 }
  0xdd   :  { %1552 = vmatpush3.msra.mxu1 %v331_v57  ;;  %1571 = vmatpush3.msra.mxu0 %v414_v58 }
  0xde   :  { %1553 = vmatprep.subr.mxu1 %v1724_v0  ;;  %1572 = vmatprep.subr.mxu0 %v1724_v0 }
  0xdf   :  { %1554 = vmatpush3.msra.mxu1 %v330_v59  ;;  %1573 = vmatpush3.msra.mxu0 %v413_v60 }
  0xe0   :  { %1555 = vmatprep.subr.mxu1 %v1724_v0  ;;  %1574 = vmatprep.subr.mxu0 %v1724_v0 }
  0xe1   :  { %1556 = vmatpush3.msra.mxu1 %v329_v61  ;;  %1575 = vmatpush3.msra.mxu0 %v412_v62 }
  0xe2   :  { %1557 = vmatprep.subr.mxu1 %v1724_v0  ;;  %1576 = vmatprep.subr.mxu0 %v1724_v0 }
  0xe3   :  { %1558 = vmatpush3.msra.mxu1 %v328_v63  ;;  %1559 = vmatprep.mubr.msk.f32.mxu1 %vm1725_vm0, %v1724_v0 }
  0xe4   :  { %1577 = vmatpush3.msra.mxu0 %v411_v1  ;;  %1578 = vmatprep.mubr.msk.f32.mxu0 %vm1725_vm0, %v1724_v0 }
  0xe5   :  { %1560 = vmatmul.mubr.msk.f32.vlgmr.msra.gmra.mxu1 %vm85_vm1, %v156_v47  ;;  %1579 = vmatmul.mubr.msk.f32.vlgmr.msra.gmra.mxu0 %vm85_vm1, %v156_v47 }
  0xe6   :  { %1581 = vmatprep.subr.mxu1 %v1724_v0  ;;  %1600 = vmatprep.subr.mxu0 %v1724_v0 }
  0xe7   :  { %1597 = vmatprep.mubr.msk.f32.mxu1 %vm1725_vm0, %v1724_v0  ;;  %1616 = vmatprep.mubr.msk.f32.mxu0 %vm1725_vm0, %v1724_v0 }
  0xe8   :  { %1582 = vmatpush3.msra.mxu1 %v770_v2  ;;  %1601 = vmatpush3.msra.mxu0 %v856_v3 }
  0xe9   :  { %1583 = vmatprep.subr.mxu1 %v1724_v0  ;;  %1602 = vmatprep.subr.mxu0 %v1724_v0 }
  0xea   :  { %1584 = vmatpush3.msra.mxu1 %v769_v4  ;;  %1603 = vmatpush3.msra.mxu0 %v855_v5 }
  0xeb   :  { %1585 = vmatprep.subr.mxu1 %v1724_v0  ;;  %1604 = vmatprep.subr.mxu0 %v1724_v0 }
  0xec   :  { %1586 = vmatpush3.msra.mxu1 %v768_v6  ;;  %1605 = vmatpush3.msra.mxu0 %v854_v7 }
  0xed   :  { %1587 = vmatprep.subr.mxu1 %v1724_v0  ;;  %1606 = vmatprep.subr.mxu0 %v1724_v0 }
  0xee   :  { %1588 = vmatpush3.msra.mxu1 %v767_v8  ;;  %1607 = vmatpush3.msra.mxu0 %v853_v9  ;;  %v1377_v9 = vld [vmem:[%s2225_s0 + $0x242] ss:$0 sm:$0xff] }
  0xef   :  { %1589 = vmatprep.subr.mxu1 %v1724_v0  ;;  %1608 = vmatprep.subr.mxu0 %v1724_v0 }
  0xf0   :  { %1590 = vmatpush3.msra.mxu1 %v766_v10  ;;  %1609 = vmatpush3.msra.mxu0 %v852_v11 }
  0xf1   :  { %1591 = vmatprep.subr.mxu1 %v1724_v0  ;;  %1610 = vmatprep.subr.mxu0 %v1724_v0 }
  0xf2   :  { %1592 = vmatpush3.msra.mxu1 %v765_v12  ;;  %1611 = vmatpush3.msra.mxu0 %v851_v13 }
  0xf3   :  { %1593 = vmatprep.subr.mxu1 %v1724_v0  ;;  %1612 = vmatprep.subr.mxu0 %v1724_v0 }
  0xf4   :  { %1594 = vmatpush3.msra.mxu1 %v764_v14  ;;  %1613 = vmatpush3.msra.mxu0 %v850_v15 }
  0xf5   :  { %1595 = vmatprep.subr.mxu1 %v1724_v0  ;;  %1614 = vmatprep.subr.mxu0 %v1724_v0 }
  0xf6   :  { %1596 = vmatpush3.msra.mxu1 %v763_v16  ;;  %1615 = vmatpush3.msra.mxu0 %v849_v17 }
  0xf7   :  { %1619 = vmatprep.subr.mxu1 %v1724_v0  ;;  %1638 = vmatprep.subr.mxu0 %v1724_v0 }
 0x194   :  { %v241_v23 = vpop.f32.mrf.mxu1  ;;  %v324_v24 = vpop.f32.mrf.mxu0 }
 0x195   :  { %v325_v25 = vadd.f32 %v1375_v21, %v324_v24  ;;  %v242_v39 = vadd.f32 %v1373_v32, %v241_v23 }
 0x196   :  { %v1523_v26 = vpop.f32.mrf.mxu1  ;;  %v1542_v28 = vpop.f32.mrf.mxu0 }
 0x197   :  { %v495_v30 = vcombine.high %v325_v25, %v325_v25  ;;  %v502_v31 = vrot.slane %v325_v25, %v2018_v22  ;;  %v2045_v25 = vpop.permute.xlu1 %34 }
 0x199   :  { %v509_v33 = vrot.slane %v495_v30, %v2018_v22  ;;  %v510_v34 = vcombine.high %v502_v31, %v502_v31  ;;  %v518_v35 = vrot.slane %v502_v31, %v2018_v22 }
 0x19b   :  { %v511_v36 = vcombine.high %v509_v33, %v509_v33  ;;  %v525_v27 = vrot.slane %v509_v33, %v2018_v22  ;;  %v532_v37 = vrot.slane %v510_v34, %v2018_v22  ;;  %v540_v38 = vcombine.high %v518_v35, %v518_v35 }
 0x19c   :  { %v547_v40 = vrot.slane %v518_v35, %v1861_v29  ;;  %v2047_v35 = vpop.permute.xlu0 %27 }
 0x19d   :  { %v539_v41 = vrot.slane %v511_v36, %v2018_v22  ;;  %v541_v42 = vcombine.high %v525_v27, %v525_v27  ;;  %v542_v43 = vcombine.high %v532_v37, %v532_v37  ;;  %v551_v44 = vrot.slane %v532_v37, %v1861_v29  ;;  %v2051_v37 = vpop.permute.xlu1 %41 }
 0x19e   :  { %v555_v45 = vrot.slane %v540_v38, %v1861_v29  ;;  %v563_v46 = vrot.slane %v525_v27, %v1861_v29  ;;  %v584_v47 = vadd.f32 %v547_v40, %v242_v39 }
 0x19f   :  { %v543_v48 = vcombine.high %v539_v41, %v539_v41  ;;  %v559_v49 = vrot.slane %v542_v43, %v1861_v29  ;;  %v567_v50 = vrot.slane %v539_v41, %v1861_v29  ;;  %v571_v51 = vrot.slane %v541_v42, %v1861_v29 }
 0x1a0   :  { %v585_v52 = vadd.f32 %v551_v44, %v242_v39  ;;  %v586_v53 = vadd.f32 %v555_v45, %v242_v39  ;;  %v588_v54 = vadd.f32 %v563_v46, %v242_v39  ;;  %v1381_v55 = vmul.f32 -1.442695, %v584_v47  ;;  %v2054_v42 = vpop.permute.xlu0 %48 }
 0x1a1   :  { %v575_v56 = vrot.slane %v543_v48, %v1861_v29  ;;  %v587_v57 = vadd.f32 %v559_v49, %v242_v39  ;;  %v589_v58 = vadd.f32 %v567_v50, %v242_v39  ;;  %v590_v59 = vadd.f32 %v571_v51, %v242_v39  ;;  %v2059_v48 = vpop.permute.xlu1 %55 }
 0x1a2   :  { %1660 = vpow2.f32 %v1381_v55  ;;  %v1382_v60 = vmul.f32 -1.442695, %v585_v52  ;;  %v1383_v61 = vmul.f32 -1.442695, %v586_v53  ;;  %v1385_v1 = vmul.f32 -1.442695, %v588_v54 }
 0x1a3   :  { %v591_v62 = vadd.f32 %v575_v56, %v242_v39  ;;  %v1384_v63 = vmul.f32 -1.442695, %v587_v57  ;;  %v1386_v2 = vmul.f32 -1.442695, %v589_v58  ;;  %v1387_v3 = vmul.f32 -1.442695, %v590_v59 }
 0x1a4   :  { %1662 = vpow2.f32 %v1382_v60 }
 0x1a5   :  { %1664 = vpow2.f32 %v1383_v61  ;;  %v407_v4 = vpop.f32.mrf.mxu1  ;;  %v2037_v5 = vpop.f32.mrf.mxu0  ;;  %v1388_v6 = vmul.f32 -1.442695, %v591_v62 }
 0x1a6   :  { %1666 = vpow2.f32 %v1384_v63  ;;  %v408_v12 = vadd.f32 %v1377_v9, %v407_v4 }
 0x1a7   :  { %1668 = vpow2.f32 %v1385_v1  ;;  %v1561_v7 = vpop.f32.mrf.mxu1  ;;  %v1580_v8 = vpop.f32.mrf.mxu0 }
 0x1a8   :  { %1670 = vpow2.f32 %v1386_v2  ;;  %v656_v20 = vrot.slane %v408_v12, %v2018_v22  ;;  %v649_v31 = vcombine.high %v408_v12, %v408_v12  ;;  %v2070_v2 = vpop.permute.xlu0 %62 }
 0x1a9   :  { %1672 = vpow2.f32 %v1387_v3 }
 0x1aa   :  { %1674 = vpow2.f32 %v1388_v6  ;;  %v664_v33 = vcombine.high %v656_v20, %v656_v20  ;;  %v663_v36 = vrot.slane %v649_v31, %v2018_v22  ;;  %v672_v27 = vrot.slane %v656_v20, %v2018_v22 }
 0x1ac   :  { %v686_v38 = vrot.slane %v664_v33, %v2018_v22  ;;  %v665_v40 = vcombine.high %v663_v36, %v663_v36  ;;  %v694_v41 = vcombine.high %v672_v27, %v672_v27  ;;  %v701_v44 = vrot.slane %v672_v27, %v1861_v29  ;;  %v1379_v27 = vld [vmem:[%s2225_s0 + $0x243] ss:$0 sm:$0xff] }
 0x1ad   :  { %v679_v47 = vrot.slane %v663_v36, %v2018_v22 }
 0x1ae   :  { %v696_v45 = vcombine.high %v686_v38, %v686_v38  ;;  %v705_v52 = vrot.slane %v686_v38, %v1861_v29  ;;  %v709_v55 = vrot.slane %v694_v41, %v1861_v29  ;;  %v693_v56 = vrot.slane %v665_v40, %v2018_v22 }
 0x1af   :  { %v1661_v10 = vpop.eup %1660  ;;  %v717_v1 = vrot.slane %v679_v47, %v1861_v29  ;;  %v695_v3 = vcombine.high %v679_v47, %v679_v47  ;;  %v491_v41 = vadd.f32 %v1379_v27, %v2037_v5  ;;  %v1022_v47 = vld [vmem:[%s2225_s0 + $0x238] sm:$0xff]  ;;  %v1021_v5 = vld [vmem:[%s2225_s0 + $0x230] sm:$0xff] }
 0x1b0   :  { %v616_v11 = vadd.f32 1.0, %v1661_v10  ;;  %v713_v60 = vrot.slane %v696_v45, %v1861_v29  ;;  %v721_v12 = vrot.slane %v693_v56, %v1861_v29 }
 0x1b1   :  { %v1663_v13 = vpop.eup %1662 }
 0x1b2   :  { %v1665_v14 = vpop.eup %1664  ;;  %v617_v15 = vadd.f32 1.0, %v1663_v13  ;;  %1676 = vrcp.f32 %v616_v11  ;;  %v2076_v13 = vpop.permute.xlu1 %69 }
 0x1b3   :  { %v1667_v16 = vpop.eup %1666  ;;  %v618_v17 = vadd.f32 1.0, %v1665_v14 }
 0x1b4   :  { %v1669_v19 = vpop.eup %1668  ;;  %1678 = vrcp.f32 %v617_v15  ;;  %v619_v21 = vadd.f32 1.0, %v1667_v16 }
 0x1b5   :  { %v1671_v23 = vpop.eup %1670  ;;  %v620_v24 = vadd.f32 1.0, %v1669_v19  ;;  %1680 = vrcp.f32 %v618_v17  ;;  %v697_v17 = vcombine.high %v693_v56, %v693_v56  ;;  %v934_v56 = vld [vmem:[%s2225_s0 + $0x1d0] sm:$0xff] }
 0x1b6   :  { %v1673_v26 = vpop.eup %1672  ;;  %1682 = vrcp.f32 %v619_v21  ;;  %v621_v28 = vadd.f32 1.0, %v1671_v23  ;;  %v725_v23 = vrot.slane %v695_v3, %v1861_v29 }
 0x1b7   :  { %v1675_v30 = vpop.eup %1674  ;;  %1684 = vrcp.f32 %v620_v24  ;;  %v622_v32 = vadd.f32 1.0, %v1673_v26  ;;  %v729_v31 = vrot.slane %v697_v17, %v1861_v29 }
 0x1b8   :  { %1686 = vrcp.f32 %v621_v28  ;;  %v623_v34 = vadd.f32 1.0, %v1675_v30 }
 0x1b9   :  { %1688 = vrcp.f32 %v622_v32 }
 0x1ba   :  { %1690 = vrcp.f32 %v623_v34 }
 0x1bf   :  { %v1677_v39 = vpop.eup %1676 }
 0x1c0   :  { %v640_v43 = vmul.f32 %v1677_v39, %v2042_v18 }
 0x1c1   :  { %v1679_v46 = vpop.eup %1678 }
 0x1c2   :  { %v1681_v49 = vpop.eup %1680  ;;  %v738_v50 = vmul.f32 %v701_v44, %v640_v43  ;;  %v641_v51 = vmul.f32 %v1679_v46, %v2047_v35  ;;  %v939_v46 = vld [vmem:[%s2225_s0 + $0x1f8] sm:$0xff] }
 0x1c3   :  { %v1683_v53 = vpop.eup %1682  ;;  %v642_v54 = vmul.f32 %v1681_v49, %v2045_v25  ;;  %v938_v49 = vld [vmem:[%s2225_s0 + $0x1f0] sm:$0xff] }
 0x1c4   :  { %v1685_v57 = vpop.eup %1684  ;;  %v739_v58 = vmul.f32 %v705_v52, %v641_v51  ;;  %v643_v59 = vmul.f32 %v1683_v53, %v2051_v37  ;;  %v746_v6 = vsel %vm85_vm1, %v738_v50, 0.0  ;;  %v937_v50 = vld [vmem:[%s2225_s0 + $0x1e8] sm:$0xff]  ;;  %v936_v52 = vld [vmem:[%s2225_s0 + $0x1e0] sm:$0xff] }
 0x1c5   :  { %v1687_v61 = vpop.eup %1686  ;;  %v740_v62 = vmul.f32 %v709_v55, %v642_v54  ;;  %v644_v63 = vmul.f32 %v1685_v57, %v2054_v42  ;;  %v1020_v51 = vld [vmem:[%s2225_s0 + $0x228] sm:$0xff]  ;;  %v1019_v53 = vld [vmem:[%s2225_s0 + $0x220] sm:$0xff]  ;;  %v935_v54 = vld [vmem:[%s2225_s0 + $0x1d8] sm:$0xff] }
 0x1c6   :  { %v1689_v4 = vpop.eup %1688  ;;  %v747_v7 = vsel %vm85_vm1, %v739_v58, 0.0  ;;  %v741_v8 = vmul.f32 %v713_v60, %v643_v59  ;;  %v645_v9 = vmul.f32 %v1687_v61, %v2059_v48  ;;  %v1018_v55 = vld [vmem:[%s2225_s0 + $0x218] sm:$0xff]  ;;  %v1017_v57 = vld [vmem:[%s2225_s0 + $0x210] sm:$0xff]  ;;  %v933_v58 = vld [vmem:[%s2225_s0 + $0x1c8] sm:$0xff] }
 0x1c7   :  { %v1691_v10 = vpop.eup %1690  ;;  %v748_v11 = vadd.f32 %v747_v7, %v746_v6  ;;  %v749_v14 = vsel %vm85_vm1, %v740_v62, 0.0  ;;  %v742_v15 = vmul.f32 %v717_v1, %v644_v63  ;;  %v646_v16 = vmul.f32 %v1689_v4, %v2070_v2  ;;  %v1016_v59 = vld [vmem:[%s2225_s0 + $0x208] sm:$0xff]  ;;  %v932_v60 = vld [vmem:[%s2225_s0 + $0x1c0] sm:$0xff] }
 0x1c8   :  { %v751_v20 = vsel %vm85_vm1, %v741_v8, 0.0  ;;  %v743_v21 = vmul.f32 %v721_v12, %v645_v9  ;;  %v647_v24 = vmul.f32 %v1691_v10, %v2076_v13  ;;  %v1015_v61 = vld [vmem:[%s2225_s0 + $0x200] sm:$0xff] }
 0x1c9   :  { %v750_v19 = vadd.f32 %v749_v14, %v748_v11  ;;  %v753_v28 = vsel %vm85_vm1, %v742_v15, 0.0  ;;  %v744_v30 = vmul.f32 %v725_v23, %v646_v16  ;;  %v1391_v62 = vld [vmem:[%s2225_s0 + $0x245] ss:$0 sm:$0xff] }
 0x1ca   :  { %v755_v33 = vsel %vm85_vm1, %v743_v21, 0.0  ;;  %v745_v34 = vmul.f32 %v729_v31, %v647_v24 }
 0x1cb   :  { %v752_v26 = vadd.f32 %v751_v20, %v750_v19  ;;  %v757_v38 = vsel %vm85_vm1, %v744_v30, 0.0 }
 0x1cc   :  { %v759_v40 = vsel %vm85_vm1, %v745_v34, 0.0 }
 0x1cd   :  { %v754_v32 = vadd.f32 %v753_v28, %v752_v26 }
 0x1cf   :  { %v756_v36 = vadd.f32 %v755_v33, %v754_v32 }
 0x1d1   :  { %v758_v39 = vadd.f32 %v757_v38, %v756_v36 }
 0x1d3   :  { %v760_v43 = vadd.f32 %v759_v40, %v758_v39 }
 0x1d5   :  { %v761_v44 = vadd.f32 %v760_v43, %v491_v41 }
 0x1d7   :  { %v762_v45 = vmax.f32 %v761_v44, 0.0 }
 0x1d9   :  { %1598 = vmatmul.mubr.msk.f32.vlgmr.msra.gmra.mxu1 %vm85_vm1, %v762_v45  ;;  %1617 = vmatmul.mubr.msk.f32.vlgmr.msra.gmra.mxu0 %vm85_vm1, %v762_v45 }
 0x1da   :  { %1620 = vmatpush3.msra.mxu1 %v939_v46  ;;  %1639 = vmatpush3.msra.mxu0 %v1022_v47 }
 0x1db   :  { %1621 = vmatprep.subr.mxu1 %v1724_v0  ;;  %1640 = vmatprep.subr.mxu0 %v1724_v0 }
 0x1dc   :  { %1622 = vmatpush3.msra.mxu1 %v938_v49  ;;  %1641 = vmatpush3.msra.mxu0 %v1021_v5 }
 0x1dd   :  { %1623 = vmatprep.subr.mxu1 %v1724_v0  ;;  %1642 = vmatprep.subr.mxu0 %v1724_v0 }
 0x1de   :  { %1624 = vmatpush3.msra.mxu1 %v937_v50  ;;  %1643 = vmatpush3.msra.mxu0 %v1020_v51 }
 0x1df   :  { %1625 = vmatprep.subr.mxu1 %v1724_v0  ;;  %1644 = vmatprep.subr.mxu0 %v1724_v0 }
 0x1e0   :  { %1626 = vmatpush3.msra.mxu1 %v936_v52  ;;  %1645 = vmatpush3.msra.mxu0 %v1019_v53 }
 0x1e1   :  { %1627 = vmatprep.subr.mxu1 %v1724_v0  ;;  %1646 = vmatprep.subr.mxu0 %v1724_v0 }
 0x1e2   :  { %1628 = vmatpush3.msra.mxu1 %v935_v54  ;;  %1647 = vmatpush3.msra.mxu0 %v1018_v55 }
 0x1e3   :  { %1629 = vmatprep.subr.mxu1 %v1724_v0  ;;  %1648 = vmatprep.subr.mxu0 %v1724_v0 }
 0x1e4   :  { %1630 = vmatpush3.msra.mxu1 %v934_v56  ;;  %1649 = vmatpush3.msra.mxu0 %v1017_v57  ;;  %v1393_v57 = vld [vmem:[%s2225_s0 + $0x246] ss:$0 sm:$0xff] }
 0x1e5   :  { %1631 = vmatprep.subr.mxu1 %v1724_v0  ;;  %1650 = vmatprep.subr.mxu0 %v1724_v0 }
 0x1e6   :  { %1632 = vmatpush3.msra.mxu1 %v933_v58  ;;  %1651 = vmatpush3.msra.mxu0 %v1016_v59 }
 0x1e7   :  { %1633 = vmatprep.subr.mxu1 %v1724_v0  ;;  %1652 = vmatprep.subr.mxu0 %v1724_v0 }
 0x1e8   :  { %1634 = vmatpush3.msra.mxu1 %v932_v60  ;;  %1635 = vmatprep.mubr.msk.f32.mxu1 %vm1725_vm0, %v1724_v0 }
 0x1e9   :  { %1653 = vmatpush3.msra.mxu0 %v1015_v61  ;;  %1654 = vmatprep.mubr.msk.f32.mxu0 %vm1725_vm0, %v1724_v0  ;;  %v1389_v0 = vld [vmem:[%s2225_s0 + $0x244] ss:$0 sm:$0xff] }
 0x1ea   :  { %1636 = vmatmul.mubr.msk.f32.vlgmr.msra.gmra.mxu1 %vm85_vm1, %v762_v45  ;;  %1655 = vmatmul.mubr.msk.f32.vlgmr.msra.gmra.mxu0 %vm85_vm1, %v762_v45 }
 0x299   :  { %v845_v63 = vpop.f32.mrf.mxu1  ;;  %v928_v1 = vpop.f32.mrf.mxu0 }
 0x29a   :  { %v929_v3 = vadd.f32 %v1391_v62, %v928_v1  ;;  %v846_v17 = vadd.f32 %v1389_v0, %v845_v63 }
 0x29b   :  { %v1599_v4 = vpop.f32.mrf.mxu1  ;;  %v1618_v6 = vpop.f32.mrf.mxu0 }
 0x29c   :  { %v1099_v7 = vcombine.high %v929_v3, %v929_v3  ;;  %v1106_v8 = vrot.slane %v929_v3, %v2018_v22 }
 0x29e   :  { %v1113_v9 = vrot.slane %v1099_v7, %v2018_v22  ;;  %v1114_v10 = vcombine.high %v1106_v8, %v1106_v8  ;;  %v1122_v11 = vrot.slane %v1106_v8, %v2018_v22 }
 0x2a0   :  { %v1115_v12 = vcombine.high %v1113_v9, %v1113_v9  ;;  %v1129_v14 = vrot.slane %v1113_v9, %v2018_v22  ;;  %v1136_v15 = vrot.slane %v1114_v10, %v2018_v22  ;;  %v1144_v16 = vcombine.high %v1122_v11, %v1122_v11 }
 0x2a1   :  { %v1151_v19 = vrot.slane %v1122_v11, %v1861_v29 }
 0x2a2   :  { %v1143_v20 = vrot.slane %v1115_v12, %v2018_v22  ;;  %v1145_v21 = vcombine.high %v1129_v14, %v1129_v14  ;;  %v1146_v23 = vcombine.high %v1136_v15, %v1136_v15  ;;  %v1155_v24 = vrot.slane %v1136_v15, %v1861_v29 }
 0x2a3   :  { %v1159_v26 = vrot.slane %v1144_v16, %v1861_v29  ;;  %v1167_v28 = vrot.slane %v1129_v14, %v1861_v29  ;;  %v1188_v30 = vadd.f32 %v1151_v19, %v846_v17 }
 0x2a4   :  { %v1147_v31 = vcombine.high %v1143_v20, %v1143_v20  ;;  %v1163_v32 = vrot.slane %v1146_v23, %v1861_v29  ;;  %v1171_v33 = vrot.slane %v1143_v20, %v1861_v29  ;;  %v1175_v34 = vrot.slane %v1145_v21, %v1861_v29 }
 0x2a5   :  { %v1189_v36 = vadd.f32 %v1155_v24, %v846_v17  ;;  %v1190_v27 = vadd.f32 %v1159_v26, %v846_v17  ;;  %v1192_v38 = vadd.f32 %v1167_v28, %v846_v17  ;;  %v1397_v39 = vmul.f32 -1.442695, %v1188_v30 }
 0x2a6   :  { %v1179_v40 = vrot.slane %v1147_v31, %v1861_v29  ;;  %v1191_v41 = vadd.f32 %v1163_v32, %v846_v17  ;;  %v1193_v43 = vadd.f32 %v1171_v33, %v846_v17  ;;  %v1194_v44 = vadd.f32 %v1175_v34, %v846_v17 }
 0x2a7   :  { %1692 = vpow2.f32 %v1397_v39  ;;  %v1398_v45 = vmul.f32 -1.442695, %v1189_v36  ;;  %v1399_v46 = vmul.f32 -1.442695, %v1190_v27  ;;  %v1401_v5 = vmul.f32 -1.442695, %v1192_v38 }
 0x2a8   :  { %v1195_v47 = vadd.f32 %v1179_v40, %v846_v17  ;;  %v1400_v49 = vmul.f32 -1.442695, %v1191_v41  ;;  %v1402_v50 = vmul.f32 -1.442695, %v1193_v43  ;;  %v1403_v51 = vmul.f32 -1.442695, %v1194_v44 }
 0x2a9   :  { %1694 = vpow2.f32 %v1398_v45 }
 0x2aa   :  { %1696 = vpow2.f32 %v1399_v46  ;;  %v1011_v52 = vpop.f32.mrf.mxu1  ;;  %v2182_v53 = vpop.f32.mrf.mxu0  ;;  %v1404_v54 = vmul.f32 -1.442695, %v1195_v47 }
 0x2ab   :  { %1698 = vpow2.f32 %v1400_v49  ;;  %v1012_v60 = vadd.f32 %v1393_v57, %v1011_v52 }
 0x2ac   :  { %1700 = vpow2.f32 %v1401_v5  ;;  %v1637_v55 = vpop.f32.mrf.mxu1  ;;  %v1656_v56 = vpop.f32.mrf.mxu0 }
 0x2ad   :  { %1702 = vpow2.f32 %v1402_v50  ;;  %v1260_v7 = vrot.slane %v1012_v60, %v2018_v22  ;;  %v1253_v14 = vcombine.high %v1012_v60, %v1012_v60 }
 0x2ae   :  { %1704 = vpow2.f32 %v1403_v51 }
 0x2af   :  { %1706 = vpow2.f32 %v1404_v54  ;;  %v1268_v16 = vcombine.high %v1260_v7, %v1260_v7  ;;  %v1267_v17 = vrot.slane %v1253_v14, %v2018_v22  ;;  %v1276_v19 = vrot.slane %v1260_v7, %v2018_v22 }
 0x2b1   :  { %v1290_v20 = vrot.slane %v1268_v16, %v2018_v22  ;;  %v1269_v23 = vcombine.high %v1267_v17, %v1267_v17  ;;  %v1298_v24 = vcombine.high %v1276_v19, %v1276_v19  ;;  %v1305_v30 = vrot.slane %v1276_v19, %v1861_v29 }
 0x2b2   :  { %v1283_v32 = vrot.slane %v1267_v17, %v2018_v22 }
 0x2b3   :  { %v1300_v28 = vcombine.high %v1290_v20, %v1290_v20  ;;  %v1309_v36 = vrot.slane %v1290_v20, %v1861_v29  ;;  %v1297_v40 = vrot.slane %v1269_v23, %v2018_v22  ;;  %v1313_v41 = vrot.slane %v1298_v24, %v1861_v29 }
 0x2b4   :  { %v1693_v58 = vpop.eup %1692  ;;  %v1321_v49 = vrot.slane %v1283_v32, %v1861_v29 }
 0x2b5   :  { %v1220_v59 = vadd.f32 1.0, %v1693_v58  ;;  %v1317_v44 = vrot.slane %v1300_v28, %v1861_v29  ;;  %v1325_v56 = vrot.slane %v1297_v40, %v1861_v29 }
 0x2b6   :  { %v1695_v61 = vpop.eup %1694 }
 0x2b7   :  { %v1697_v62 = vpop.eup %1696  ;;  %v1221_v63 = vadd.f32 1.0, %v1695_v61  ;;  %1708 = vrcp.f32 %v1220_v59 }
 0x2b8   :  { %v1699_v1 = vpop.eup %1698  ;;  %v1222_v3 = vadd.f32 1.0, %v1697_v62 }
 0x2b9   :  { %v1701_v4 = vpop.eup %1700  ;;  %v1223_v6 = vadd.f32 1.0, %v1699_v1  ;;  %1710 = vrcp.f32 %v1221_v63 }
 0x2ba   :  { %v1703_v8 = vpop.eup %1702  ;;  %v1224_v0 = vadd.f32 1.0, %v1701_v4  ;;  %1712 = vrcp.f32 %v1222_v3 }
 0x2bb   :  { %v1705_v9 = vpop.eup %1704  ;;  %v1225_v10 = vadd.f32 1.0, %v1703_v8  ;;  %1714 = vrcp.f32 %v1223_v6 }
 0x2bc   :  { %v1707_v11 = vpop.eup %1706  ;;  %v1226_v12 = vadd.f32 1.0, %v1705_v9  ;;  %1716 = vrcp.f32 %v1224_v0 }
 0x2bd   :  { %v1227_v15 = vadd.f32 1.0, %v1707_v11  ;;  %1718 = vrcp.f32 %v1225_v10 }
 0x2be   :  { %1720 = vrcp.f32 %v1226_v12 }
 0x2bf   :  { %1722 = vrcp.f32 %v1227_v15 }
 0x2c4   :  { %v1709_v21 = vpop.eup %1708 }
 0x2c5   :  { %v1244_v26 = vmul.f32 %v1709_v21, %v2042_v18 }
 0x2c6   :  { %v1711_v31 = vpop.eup %1710 }
 0x2c7   :  { %v1713_v33 = vpop.eup %1712  ;;  %v1245_v34 = vmul.f32 %v1711_v31, %v2047_v35  ;;  %v1342_v27 = vmul.f32 %v1305_v30, %v1244_v26  ;;  %v1299_v35 = vcombine.high %v1283_v32, %v1283_v32 }
 0x2c8   :  { %v1715_v38 = vpop.eup %1714  ;;  %v1246_v39 = vmul.f32 %v1713_v33, %v2045_v25 }
 0x2c9   :  { %v1717_v18 = vpop.eup %1716  ;;  %v1247_v43 = vmul.f32 %v1715_v38, %v2051_v37  ;;  %v1343_v45 = vmul.f32 %v1309_v36, %v1245_v34  ;;  %v1350_v25 = vsel %vm85_vm1, %v1342_v27, 0.0  ;;  %v1301_v37 = vcombine.high %v1297_v40, %v1297_v40 }
 0x2ca   :  { %v1719_v46 = vpop.eup %1718  ;;  %v1248_v47 = vmul.f32 %v1717_v18, %v2054_v42  ;;  %v1344_v5 = vmul.f32 %v1313_v41, %v1246_v39  ;;  %v1329_v60 = vrot.slane %v1299_v35, %v1861_v29 }
 0x2cb   :  { %v1721_v50 = vpop.eup %1720  ;;  %v1345_v51 = vmul.f32 %v1317_v44, %v1247_v43  ;;  %v1351_v22 = vsel %vm85_vm1, %v1343_v45, 0.0  ;;  %v1249_v52 = vmul.f32 %v1719_v46, %v2059_v48  ;;  %v1333_v48 = vrot.slane %v1301_v37, %v1861_v29 }
 0x2cc   :  { %v1723_v54 = vpop.eup %1722  ;;  %v1352_v55 = vadd.f32 %v1351_v22, %v1350_v25  ;;  %v1346_v57 = vmul.f32 %v1321_v49, %v1248_v47  ;;  %v1353_v42 = vsel %vm85_vm1, %v1344_v5, 0.0  ;;  %v1250_v58 = vmul.f32 %v1721_v50, %v2070_v2  ;;  %v1395_v2 = vld [vmem:[%s2225_s0 + $0x247] ss:$0 sm:$0xff] }
 0x2cd   :  { %v1251_v61 = vmul.f32 %v1723_v54, %v2076_v13  ;;  %v1347_v62 = vmul.f32 %v1325_v56, %v1249_v52  ;;  %v1355_v63 = vsel %vm85_vm1, %v1345_v51, 0.0  ;;  %v1095_v11 = vadd.f32 %v1395_v2, %v2182_v53 }
 0x2ce   :  { %v1354_v59 = vadd.f32 %v1353_v42, %v1352_v55  ;;  %v1348_v3 = vmul.f32 %v1329_v60, %v1250_v58  ;;  %v1357_v4 = vsel %vm85_vm1, %v1346_v57, 0.0 }
 0x2cf   :  { %v1349_v7 = vmul.f32 %v1333_v48, %v1251_v61  ;;  %v1359_v8 = vsel %vm85_vm1, %v1347_v62, 0.0 }
 0x2d0   :  { %v1356_v1 = vadd.f32 %v1355_v63, %v1354_v59  ;;  %v1361_v13 = vsel %vm85_vm1, %v1348_v3, 0.0 }
 0x2d1   :  { %v1363_v10 = vsel %vm85_vm1, %v1349_v7, 0.0 }
 0x2d2   :  { %v1358_v6 = vadd.f32 %v1357_v4, %v1356_v1 }
 0x2d4   :  { %v1360_v0 = vadd.f32 %v1359_v8, %v1358_v6 }
 0x2d6   :  { %v1362_v9 = vadd.f32 %v1361_v13, %v1360_v0 }
 0x2d8   :  { %v1364_v29 = vadd.f32 %v1363_v10, %v1362_v9 }
 0x2da   :  { %v1365_v12 = vadd.f32 %v1364_v29, %v1095_v11 }
 0x2dc   :  { %1366 = vst.msk [vmem:[%s2228_s3] sm:$0xff] %vm85_vm1, %v1365_v12 }

</bundles_post_ra>
